<compile_context>
chip_gen: v7x
topology: tpu7x:2x2x1
jax: 0.10.0
libtpu: 0.0.40
codegen_flags: <defaults>
</compile_context>

<pallas_src>
import functools

import jax
import jax.numpy as jnp
from jax.experimental import pallas as pl
from jax.experimental.pallas import tpu as pltpu

KH, KW = 3, 3
C_IN, C_OUT = 16, 32
LANE = 128


def _round_up(x, m):
    return (x + m - 1) // m * m


def _conv_relu_kernel(x_ref, w_ref, b_ref, o_ref, *, bn, h, oh):
    # x_ref: (bn*H, W*Cin)    bf16 -- bn images, rows folded into the GEMM M dim
    # w_ref: (KH, W*Cin, NP)  bf16 -- block-Toeplitz weights, VMEM-resident
    # b_ref: (1, NP)          f32  -- bias tiled over OW, zero-padded to NP
    # o_ref: (bn, OH, NP)     f32  -- NHWC-flat, lane-dense (padded) output
    m = bn * h
    xf = x_ref[...]                                            # one (M, K) LHS for all dy
    # KH accumulating GEMMs with a saturated M dimension (M = bn*H, not OH).
    ys = [jnp.dot(xf, w_ref[dy], preferred_element_type=jnp.float32)
          for dy in range(KH)]                                 # each (bn*H, NP) f32
    # dy row-shift on the f32 GEMM outputs:  out[b, r] = sum_dy y_dy[b*H + r + dy].
    # Rows that straddle image boundaries are computed but never stored.
    z = ys[0][: m - (KH - 1), :]
    for dy in range(1, KH):
        z = z + ys[dy][dy: dy + m - (KH - 1), :]
    z = jnp.maximum(z + b_ref[...], 0.0)                       # bias + ReLU, once
    for b in range(bn):                                        # static unroll; slab stores
        o_ref[b] = z[b * h: b * h + oh, :]


def _pick_bn(n, h, oh, w_cin, npad):
    """Images per grid step.

    Prefer the whole batch in a single grid step (single-TC v5e/v6e: amortizes
    the ~0.35us per-step overhead and maximizes the folded GEMM M = bn*H).
    For larger batches fall back to the biggest divisor whose double-buffered
    blocks fit a conservative VMEM budget; the resulting multiple steps then
    shard across TensorCores on v7x via the "parallel" grid axis.
    """
    per_img = 2 * (h * w_cin * 2 + oh * npad * 4)   # double-buffered in+out bytes
    budget = 24 * 1024 * 1024                       # headroom under 32 MiB scoped VMEM
    cap = max(1, budget // per_img)
    for bn in range(min(n, cap), 0, -1):
        if n % bn:
            continue
        # The flattened-x block's second-minor dim (bn*H) must be the full dim
        # or a multiple of the 8-row sublane tile for a legal BlockSpec.
        if bn == n or (bn * h) % 8 == 0:
            return bn
    return n  # always legal (full-dim block); only hit for pathological caps


def _toeplitz_weights(weight_oihw, w_in, ow, npad):
    # (Cout, Cin, KH, KW) -> (KH, W*Cin, NP) block-Toeplitz matrices so the
    # valid conv becomes  out[y] = sum_dy  x_flat[y+dy, :] @ w_big[dy].
    # Last dim is zero-padded from OW*Cout to NP (lane-dense stores; the MXU
    # rounds N up to 128-lane tiles anyway so the pad is free compute-side).
    cout, cin = weight_oihw.shape[0], weight_oihw.shape[1]
    w_t = jnp.transpose(weight_oihw, (2, 3, 1, 0))             # (KH, KW, Cin, Cout)
    ix = jnp.arange(w_in)[:, None, None]
    ox = jnp.arange(ow)[None, :, None]
    dx = jnp.arange(KW)[None, None, :]
    sel = (ix == ox + dx).astype(w_t.dtype)                    # (W, OW, KW)
    w_big = jnp.einsum('iod,ydcf->yicof', sel, w_t)            # (KH, W, Cin, OW, Cout)
    w_big = w_big.reshape(KH, w_in * cin, ow * cout)
    return jnp.pad(w_big, ((0, 0), (0, 0), (0, npad - ow * cout)))


@jax.jit
def c3_forward(x_nchw, weight_oihw, bias):
    """Forward of C3: Conv2d(16, 32, kernel 3x3, valid) + ReLU.  x: (N, 16, H, W)."""
    n, cin, h, w = x_nchw.shape
    assert cin == C_IN
    cout = weight_oihw.shape[0]
    oh, ow = h - KH + 1, w - KW + 1
    ncols = ow * cout
    npad = _round_up(ncols, LANE)
    bn = _pick_bn(n, h, oh, w * cin, npad)

    # NCHW -> NHWC-flat (N*H, W*Cin) is the one wrapper-side input layout pass
    # required by the PyTorch interface; the bf16 cast and row-flatten are
    # fused into it.
    # TODO(synk): keep the surrounding model NHWC end-to-end to drop the
    # interface transposes entirely (and fold this one into the kernel).
    x2 = (jnp.transpose(x_nchw, (0, 2, 3, 1))
             .astype(jnp.bfloat16)
             .reshape(n * h, w * cin))

    w_big = _toeplitz_weights(weight_oihw, w, ow, npad).astype(jnp.bfloat16)
    b_big = jnp.pad(jnp.tile(bias.astype(jnp.float32), ow),
                    (0, npad - ncols)).reshape(1, npad)

    flops = 2 * KH * (n * h) * (w * cin) * npad
    bytes_accessed = (x2.size * 2 + w_big.size * 2 + b_big.size * 4
                      + n * oh * npad * 4)

    out_nhwc = pl.pallas_call(
        functools.partial(_conv_relu_kernel, bn=bn, h=h, oh=oh),
        out_shape=jax.ShapeDtypeStruct((n, oh, npad), jnp.float32),
        grid=(n // bn,),
        in_specs=[
            pl.BlockSpec((bn * h, w * cin), lambda i: (i, 0)),
            pl.BlockSpec((KH, w * cin, npad), lambda i: (0, 0, 0)),  # VMEM resident
            pl.BlockSpec((1, npad), lambda i: (0, 0)),               # VMEM resident
        ],
        out_specs=pl.BlockSpec((bn, oh, npad), lambda i: (i, 0, 0)),
        compiler_params=pltpu.CompilerParams(
            dimension_semantics=("parallel",),
            vmem_limit_bytes=32 * 1024 * 1024,
        ),
        cost_estimate=pl.CostEstimate(
            flops=flops, transcendentals=0, bytes_accessed=bytes_accessed),
    )(x2, w_big, b_big)

    # Slice off the lane pad; the reshape is free, the final transpose back to
    # NCHW is required only by the PyTorch interface.
    out = out_nhwc[:, :, :ncols].reshape(n, oh, ow, cout)
    return jnp.transpose(out, (0, 3, 1, 2))


def _reference(x_nchw, weight_oihw, bias):
    y = jax.lax.conv_general_dilated(
        x_nchw, weight_oihw, window_strides=(1, 1), padding="VALID",
        dimension_numbers=("NCHW", "OIHW", "NCHW"))
    y = y + bias.reshape(1, -1, 1, 1)
    return jnp.maximum(y, 0.0)


if __name__ == "__main__":
    key = jax.random.PRNGKey(0)
    kx, kw, kb = jax.random.split(key, 3)

    # Small shapes consistent with the module: batch=2, 16 in-channels, 12x12.
    N, H, W = 2, 12, 12
    x = jax.random.normal(kx, (N, C_IN, H, W), dtype=jnp.float32)

    # Deterministic parameter init (PyTorch-like uniform bound 1/sqrt(fan_in)).
    fan_in = C_IN * KH * KW
    bound = 1.0 / (fan_in ** 0.5)
    weight = jax.random.uniform(kw, (C_OUT, C_IN, KH, KW),
                                minval=-bound, maxval=bound, dtype=jnp.float32)
    bias = jax.random.uniform(kb, (C_OUT,), minval=-bound, maxval=bound,
                              dtype=jnp.float32)

    out = jax.block_until_ready(c3_forward(x, weight, bias))
    ref = jax.block_until_ready(_reference(x, weight, bias))

    assert out.shape == (N, C_OUT, H - 2, W - 2), out.shape
    # bf16 MXU inputs (f32 accumulate) -> compare against f32 conv with a
    # correspondingly relaxed tolerance.
    assert jnp.allclose(out, ref, atol=5e-2, rtol=5e-2), "mismatch vs reference"
    print("KERNEL_OK")
</pallas_src>

<mosaic_0001>
module attributes {stable_mosaic.version = 11 : i64} {
  func.func @_conv_relu_kernel(%arg0: i32, %arg1: memref<24x192xbf16, #tpu.memory_space<vmem>>, %arg2: memref<3x192x384xbf16, #tpu.memory_space<vmem>>, %arg3: memref<1x384xf32, #tpu.memory_space<vmem>>, %arg4: memref<2x10x384xf32, #tpu.memory_space<vmem>>) attributes {dimension_semantics = [#tpu.dimension_semantics<parallel>], iteration_bounds = array<i64: 1>, scalar_prefetch = 0 : i64, scratch_operands = 0 : i64, tpu.core_type = #tpu.core_type<tc>, window_params = [{transform_indices = @transform_0, window_bounds = array<i64: 24, 192>}, {pipeline_mode = #tpu.pipeline_mode<synchronous>, transform_indices = @transform_1, window_bounds = array<i64: 3, 192, 384>}, {pipeline_mode = #tpu.pipeline_mode<synchronous>, transform_indices = @transform_2, window_bounds = array<i64: 1, 384>}, {transform_indices = @transform_3, window_bounds = array<i64: 2, 10, 384>}]} {
    %c0 = arith.constant 0 : index
    %c0_0 = arith.constant 0 : index
    %0 = vector.load %arg1[%c0, %c0_0] : memref<24x192xbf16, #tpu.memory_space<vmem>>, vector<24x192xbf16>
    %c0_1 = arith.constant 0 : index
    %c0_2 = arith.constant 0 : index
    %c0_3 = arith.constant 0 : index
    %1 = vector.load %arg2[%c0_1, %c0_2, %c0_3] : memref<3x192x384xbf16, #tpu.memory_space<vmem>>, vector<1x192x384xbf16>
    %2 = vector.shape_cast %1 : vector<1x192x384xbf16> to vector<192x384xbf16>
    %cst = arith.constant dense<0.000000e+00> : vector<24x384xf32>
    %3 = tpu.matmul %0, %2, %cst {dimension_numbers = #tpu.dot_dimension_numbers<[1], [0], [0], [1], [0, 0, 1, 1], [], []>} : vector<24x192xbf16>, vector<192x384xbf16>, vector<24x384xf32> -> vector<24x384xf32>
    %c1 = arith.constant 1 : index
    %c0_4 = arith.constant 0 : index
    %c0_5 = arith.constant 0 : index
    %4 = vector.load %arg2[%c1, %c0_4, %c0_5] : memref<3x192x384xbf16, #tpu.memory_space<vmem>>, vector<1x192x384xbf16>
    %5 = vector.shape_cast %4 : vector<1x192x384xbf16> to vector<192x384xbf16>
    %cst_6 = arith.constant dense<0.000000e+00> : vector<24x384xf32>
    %6 = tpu.matmul %0, %5, %cst_6 {dimension_numbers = #tpu.dot_dimension_numbers<[1], [0], [0], [1], [0, 0, 1, 1], [], []>} : vector<24x192xbf16>, vector<192x384xbf16>, vector<24x384xf32> -> vector<24x384xf32>
    %c2 = arith.constant 2 : index
    %c0_7 = arith.constant 0 : index
    %c0_8 = arith.constant 0 : index
    %7 = vector.load %arg2[%c2, %c0_7, %c0_8] : memref<3x192x384xbf16, #tpu.memory_space<vmem>>, vector<1x192x384xbf16>
    %8 = vector.shape_cast %7 : vector<1x192x384xbf16> to vector<192x384xbf16>
    %cst_9 = arith.constant dense<0.000000e+00> : vector<24x384xf32>
    %9 = tpu.matmul %0, %8, %cst_9 {dimension_numbers = #tpu.dot_dimension_numbers<[1], [0], [0], [1], [0, 0, 1, 1], [], []>} : vector<24x192xbf16>, vector<192x384xbf16>, vector<24x384xf32> -> vector<24x384xf32>
    %10 = vector.extract_strided_slice %3 {offsets = [0, 0], sizes = [22, 384], strides = [1, 1]} : vector<24x384xf32> to vector<22x384xf32>
    %11 = vector.extract_strided_slice %6 {offsets = [1, 0], sizes = [22, 384], strides = [1, 1]} : vector<24x384xf32> to vector<22x384xf32>
    %12 = arith.addf %10, %11 : vector<22x384xf32>
    %13 = vector.extract_strided_slice %9 {offsets = [2, 0], sizes = [22, 384], strides = [1, 1]} : vector<24x384xf32> to vector<22x384xf32>
    %14 = arith.addf %12, %13 : vector<22x384xf32>
    %c0_10 = arith.constant 0 : index
    %c0_11 = arith.constant 0 : index
    %15 = vector.load %arg3[%c0_10, %c0_11] : memref<1x384xf32, #tpu.memory_space<vmem>>, vector<1x384xf32>
    %16 = vector.broadcast %15 : vector<1x384xf32> to vector<22x384xf32>
    %17 = arith.addf %14, %16 : vector<22x384xf32>
    %cst_12 = arith.constant 0.000000e+00 : f32
    %18 = vector.broadcast %cst_12 : f32 to vector<22x384xf32>
    %19 = arith.maximumf %17, %18 : vector<22x384xf32>
    %20 = vector.extract_strided_slice %19 {offsets = [0, 0], sizes = [10, 384], strides = [1, 1]} : vector<22x384xf32> to vector<10x384xf32>
    %c0_13 = arith.constant 0 : index
    %c0_14 = arith.constant 0 : index
    %c0_15 = arith.constant 0 : index
    %21 = vector.load %arg4[%c0_13, %c0_14, %c0_15] : memref<2x10x384xf32, #tpu.memory_space<vmem>>, vector<1x10x384xf32>
    %22 = vector.shape_cast %21 : vector<1x10x384xf32> to vector<10x384xf32>
    %23 = vector.shape_cast %20 : vector<10x384xf32> to vector<1x10x384xf32>
    tpu.vector_store %arg4[%c0_13, %c0_14, %c0_15], %23 {strides = array<i32>} : memref<2x10x384xf32, #tpu.memory_space<vmem>>, vector<1x10x384xf32>,
    %24 = vector.extract_strided_slice %19 {offsets = [12, 0], sizes = [10, 384], strides = [1, 1]} : vector<22x384xf32> to vector<10x384xf32>
    %c1_16 = arith.constant 1 : index
    %c0_17 = arith.constant 0 : index
    %c0_18 = arith.constant 0 : index
    %25 = vector.load %arg4[%c1_16, %c0_17, %c0_18] : memref<2x10x384xf32, #tpu.memory_space<vmem>>, vector<1x10x384xf32>
    %26 = vector.shape_cast %25 : vector<1x10x384xf32> to vector<10x384xf32>
    %27 = vector.shape_cast %24 : vector<10x384xf32> to vector<1x10x384xf32>
    tpu.vector_store %arg4[%c1_16, %c0_17, %c0_18], %27 {strides = array<i32>} : memref<2x10x384xf32, #tpu.memory_space<vmem>>, vector<1x10x384xf32>,
    return
  }
  func.func @transform_0(%arg0: i32) -> (i32, i32) {
    %c0_i32 = arith.constant 0 : i32
    %c0_i32_0 = arith.constant 0 : i32
    return %arg0, %c0_i32 : i32, i32
  }
  func.func @transform_1(%arg0: i32) -> (i32, i32, i32) {
    %c0_i32 = arith.constant 0 : i32
    %c0_i32_0 = arith.constant 0 : i32
    %c0_i32_1 = arith.constant 0 : i32
    %c0_i32_2 = arith.constant 0 : i32
    return %c0_i32, %c0_i32_0, %c0_i32_1 : i32, i32, i32
  }
  func.func @transform_2(%arg0: i32) -> (i32, i32) {
    %c0_i32 = arith.constant 0 : i32
    %c0_i32_0 = arith.constant 0 : i32
    %c0_i32_1 = arith.constant 0 : i32
    return %c0_i32, %c0_i32_0 : i32, i32
  }
  func.func @transform_3(%arg0: i32) -> (i32, i32, i32) {
    %c0_i32 = arith.constant 0 : i32
    %c0_i32_0 = arith.constant 0 : i32
    %c0_i32_1 = arith.constant 0 : i32
    return %arg0, %c0_i32, %c0_i32_0 : i32, i32, i32
  }
}

</mosaic_0001>

<bundles_post_ra>
// kernel: tile.8
= control target key start
LH: loop header
LB: loop body
LE: loop exit
PB: predicated region body
PF: predicated region fallthrough
CT: control target
= control target key end

     0   :  { %s28_s0 = inlined_call_operand.vmem [shape: f32[32], index: 0, kind: input, shape index: {}]   ;;  %s29_s1 = inlined_call_operand.vmem [shape: f32[10,32], index: 1, kind: output, shape index: {}]  }
   0x1   :  { %v4_v0 = vld [vmem:[%s28_s0] ss:$0 sm:$0xff] }
   0x2   :  { %5 = vst [vmem:[%s29_s1] sm:$0xff] %v4_v0  ;;  %8 = vst [vmem:[%s29_s1 + $0x8] sm:$0xff] %v4_v0 }

// kernel: tile.9
= control target key start
LH: loop header
LB: loop body
LE: loop exit
PB: predicated region body
PF: predicated region fallthrough
CT: control target
= control target key end

     0   :  { %s6_s6 = smov 3  ;;  %s13_s11 = smov 3  ;;  %vm3_vm0 = vcmask 261120   ;;  %vm10_vm1 = vcmask 1048320   ;;  %vm17_vm2 = vcmask 785920   ;;  %vm23_vm3 = vcmask 523520   ;;  %s65_s0 = inlined_call_operand.vmem [shape: f32[10,32], index: 0, kind: input, shape index: {}]   ;;  %s66_s1 = inlined_call_operand.vmem [shape: f32[320], index: 1, kind: output, shape index: {}]  }
   0x1   :  { %v33_v0 = vld [vmem:[%s65_s0 + $0x1] ss:$4 sm:$0x7]   ;;  %v31_v1 = vld [vmem:[%s65_s0 + $0x3] ss:$4 sm:%s6_s6]   ;;  %s37_s12 = smov 96  }
   0x2   :  { %8 = vrot.lane.b32.xlu0 %v31_v1, %s37_s12  ;;  %v2_v2 = vld [vmem:[%s65_s0] ss:$4 sm:$0x7]   ;;  %v32_v3 = vld [vmem:[%s65_s0 + $0x2] ss:$4 sm:%s13_s11]   ;;  %s38_s0 = smov 32  }
   0x3   :  { %21 = vrot.lane.b32.xlu1 %v33_v0, %s38_s0  ;;  %4 = vst.msk [vmem:[#allocation0] sm:$0x7] %vm3_vm0, %v2_v2   ;;  %s39_s17 = smov 64  }
   0x6   :  { %15 = vrot.lane.b32.xlu0 %v32_v3, %s39_s17 }
  0x74   :  { %v9_v4 = vpop.permute.xlu0 %8  }
  0x75   :  { %11 = vst.msk [vmem:[#allocation0] sm:$0x3] %vm10_vm1, %v9_v4   ;;  %v22_v5 = vpop.permute.xlu1 %21  }
  0x78   :  { %v16_v6 = vpop.permute.xlu0 %15  }
  0x79   :  { %18 = vst.msk [vmem:[#allocation0] sm:$0x3] %vm17_vm2, %v16_v6  }
  0x7a   :  { %24 = vst.msk [vmem:[#allocation0] sm:$0x7] %vm23_vm3, %v22_v5  }
  0x81   :  { %v28_v7 = vld [vmem:[#allocation0] sm:$0xf] }
  0x82   :  { %30 = vst [vmem:[%s66_s1] sm:$0xf] %v28_v7 }

// kernel: c3_forward.1
= control target key start
LH: loop header
LB: loop body
LE: loop exit
PB: predicated region body
PF: predicated region fallthrough
CT: control target
= control target key end

     0   :  { %v1595_v0 = vmov 0   ;;  %vm273_vm0 = vcmask 523264   ;;  %vm1068_vm1 = vcmask 1046528   ;;  %vm1111_vm2 = vcmask 1045504   ;;  %s2086_s1 = inlined_call_operand.vmem [shape: bf16[3,192,384], index: 1, kind: input, shape index: {}]   ;;  %s2087_s0 = inlined_call_operand.vmem [shape: bf16[24,192], index: 0, kind: input, shape index: {}]   ;;  %s2088_s2 = inlined_call_operand.vmem [shape: f32[1,384], index: 2, kind: input, shape index: {}]   ;;  %s2089_s3 = inlined_call_operand.vmem [shape: f32[2,10,384], index: 3, kind: output, shape index: {}]  }
   0x1   :  { %331 = vmatprep.subr.bf16.mxu1 %v1595_v0  ;;  %v1446_v1 = vld [vmem:[%s2086_s1 + $0x4] ss:$12 sps:$4 sm:$0xff]   ;;  %v1448_v2 = vld [vmem:[%s2086_s1 + $0x8] ss:$12 sps:$4 sm:$0xff]   ;;  %v1449_v3 = vld [vmem:[%s2086_s1] ss:$12 sps:$4 sm:$0xff]  }
   0x2   :  { %280 = vmatprep.subr.bf16.mxu0 %v1446_v1  ;;  %332 = vmatpush1.bf16.msra.mxu1 %v1448_v2  ;;  %v1450_v4 = vld [vmem:[%s2086_s1 + $0x1c] ss:$12 sps:$4 sm:$0xff]   ;;  %v1452_v5 = vld [vmem:[%s2086_s1 + $0x20] ss:$12 sps:$4 sm:$0xff]   ;;  %v1453_v6 = vld [vmem:[%s2086_s1 + $0x18] ss:$12 sps:$4 sm:$0xff]  }
   0x3   :  { %281 = vmatpush1.bf16.msra.mxu0 %v1449_v3  ;;  %333 = vmatprep.subr.bf16.mxu1 %v1595_v0  ;;  %v1454_v7 = vld [vmem:[%s2086_s1 + $0x34] ss:$12 sps:$4 sm:$0xff]   ;;  %v1456_v8 = vld [vmem:[%s2086_s1 + $0x38] ss:$12 sps:$4 sm:$0xff]   ;;  %v1457_v9 = vld [vmem:[%s2086_s1 + $0x30] ss:$12 sps:$4 sm:$0xff]  }
   0x4   :  { %282 = vmatprep.subr.bf16.mxu0 %v1450_v4  ;;  %v1458_v10 = vld [vmem:[%s2086_s1 + $0x4c] ss:$12 sps:$4 sm:$0xff]   ;;  %v1460_v11 = vld [vmem:[%s2086_s1 + $0x50] ss:$12 sps:$4 sm:$0xff]   ;;  %v1461_v12 = vld [vmem:[%s2086_s1 + $0x48] ss:$12 sps:$4 sm:$0xff]  }
   0x5   :  { %v1462_v13 = vld [vmem:[%s2086_s1 + $0x64] ss:$12 sps:$4 sm:$0xff]   ;;  %v1464_v14 = vld [vmem:[%s2086_s1 + $0x68] ss:$12 sps:$4 sm:$0xff]   ;;  %v1465_v15 = vld [vmem:[%s2086_s1 + $0x60] ss:$12 sps:$4 sm:$0xff]  }
   0x6   :  { %334 = vmatpush1.bf16.msra.mxu1 %v1452_v5  ;;  %v1466_v16 = vld [vmem:[%s2086_s1 + $0x7c] ss:$12 sps:$4 sm:$0xff]   ;;  %v1468_v17 = vld [vmem:[%s2086_s1 + $0x80] ss:$12 sps:$4 sm:$0xff]   ;;  %v1469_v18 = vld [vmem:[%s2086_s1 + $0x78] ss:$12 sps:$4 sm:$0xff]  }
   0x7   :  { %283 = vmatpush1.bf16.msra.mxu0 %v1453_v6  ;;  %335 = vmatprep.subr.bf16.mxu1 %v1595_v0  ;;  %v1470_v19 = vld [vmem:[%s2086_s1 + $0x94] ss:$12 sps:$4 sm:$0xff]   ;;  %v1472_v20 = vld [vmem:[%s2086_s1 + $0x98] ss:$12 sps:$4 sm:$0xff]   ;;  %v1473_v21 = vld [vmem:[%s2086_s1 + $0x90] ss:$12 sps:$4 sm:$0xff]  }
   0x8   :  { %284 = vmatprep.subr.bf16.mxu0 %v1454_v7  ;;  %v1474_v22 = vld [vmem:[%s2086_s1 + $0xac] ss:$12 sps:$4 sm:$0xff]   ;;  %v1476_v23 = vld [vmem:[%s2086_s1 + $0xb0] ss:$12 sps:$4 sm:$0xff]   ;;  %v1477_v24 = vld [vmem:[%s2086_s1 + $0xa8] ss:$12 sps:$4 sm:$0xff]  }
   0x9   :  { %v1699_v25 = vld [vmem:[%s2087_s0 + $0x4] ss:$8 sps:$4 sm:$0xff]   ;;  %v1480_v27 = vld [vmem:[%s2086_s1 + $0xc8] ss:$12 sps:$4 sm:$0xff]   ;;  %v1489_v34 = vld [vmem:[%s2086_s1 + $0xf0] ss:$12 sps:$4 sm:$0xff]  }
   0xa   :  { %336 = vmatpush1.bf16.msra.mxu1 %v1456_v8  ;;  %v1478_v26 = vld [vmem:[%s2086_s1 + $0xc4] ss:$12 sps:$4 sm:$0xff]   ;;  %1261 = vmatprep.mubr.msk.bf16.mxu1 %vm273_vm0, %v1699_v25  ;;  %v1481_v28 = vld [vmem:[%s2086_s1 + $0xc0] ss:$12 sps:$4 sm:$0xff]   ;;  %v1482_v29 = vld [vmem:[%s2086_s1 + $0xdc] ss:$12 sps:$4 sm:$0xff]  }
   0xb   :  { %285 = vmatpush1.bf16.msra.mxu0 %v1457_v9  ;;  %337 = vmatprep.subr.bf16.mxu1 %v1595_v0  ;;  %v1484_v30 = vld [vmem:[%s2086_s1 + $0xe0] ss:$12 sps:$4 sm:$0xff]   ;;  %v1485_v31 = vld [vmem:[%s2086_s1 + $0xd8] ss:$12 sps:$4 sm:$0xff]   ;;  %v1492_v36 = vld [vmem:[%s2086_s1 + $0x110] ss:$12 sps:$4 sm:$0xff]  }
   0xc   :  { %286 = vmatprep.subr.bf16.mxu0 %v1458_v10  ;;  %1259 = vmatprep.mubr.msk.bf16.mxu0 %vm273_vm0, %v1699_v25  ;;  %v1486_v32 = vld [vmem:[%s2086_s1 + $0xf4] ss:$12 sps:$4 sm:$0xff]   ;;  %v1488_v33 = vld [vmem:[%s2086_s1 + $0xf8] ss:$12 sps:$4 sm:$0xff]   ;;  %v1503_v42 = vld [vmem:[%s2086_s1 + $0x13c] ss:$12 sps:$4 sm:$0xff]  }
   0xd   :  { %v1490_v35 = vld [vmem:[%s2086_s1 + $0x10c] ss:$12 sps:$4 sm:$0xff]   ;;  %v1493_v37 = vld [vmem:[%s2086_s1 + $0x108] ss:$12 sps:$4 sm:$0xff]   ;;  %v1499_v38 = vld [vmem:[%s2086_s1 + $0x124] ss:$12 sps:$4 sm:$0xff]  }
   0xe   :  { %338 = vmatpush1.bf16.msra.mxu1 %v1460_v11  ;;  %v1751_v39 = vld [vmem:[%s2087_s0] ss:$8 sps:$4 sm:$0xff]   ;;  %v1501_v44 = vld [vmem:[%s2086_s1 + $0x138] ss:$12 sps:$4 sm:$0xff]   ;;  %v17_v45 = vld [vmem:[%s2087_s0 + $0x10] sm:$0xff]  ;;  %vm1192_vm3 = vcmask 1043456  }
   0xf   :  { %287 = vmatpush1.bf16.msra.mxu0 %v1461_v12  ;;  %339 = vmatprep.subr.bf16.mxu1 %v1595_v0  ;;  %v1500_v40 = vld [vmem:[%s2086_s1 + $0x128] ss:$12 sps:$4 sm:$0xff]   ;;  %v1497_v41 = vld [vmem:[%s2086_s1 + $0x120] ss:$12 sps:$4 sm:$0xff]   ;;  %v1778_v47 = vcombine.high %v17_v45, %v17_v45  ;;  %v1780_v48 = vcombine.low %v17_v45, %v17_v45  ;;  %v1508_v49 = vld [vmem:[%s2086_s1 + $0x158] ss:$12 sps:$4 sm:$0xff]  }
  0x10   :  { %288 = vmatprep.subr.bf16.mxu0 %v1462_v13  ;;  %v1504_v43 = vld [vmem:[%s2086_s1 + $0x140] ss:$12 sps:$4 sm:$0xff]   ;;  %v1505_v50 = vld [vmem:[%s2086_s1 + $0x150] ss:$12 sps:$4 sm:$0xff]   ;;  %v1509_v53 = vld [vmem:[%s2086_s1 + $0x168] ss:$12 sps:$4 sm:$0xff]  }
  0x11   :  { %v1507_v46 = vld [vmem:[%s2086_s1 + $0x154] ss:$12 sps:$4 sm:$0xff]   ;;  %v1511_v51 = vld [vmem:[%s2086_s1 + $0x16c] ss:$12 sps:$4 sm:$0xff]   ;;  %v1512_v52 = vld [vmem:[%s2086_s1 + $0x170] ss:$12 sps:$4 sm:$0xff]  }
  0x12   :  { %340 = vmatpush1.bf16.msra.mxu1 %v1464_v14  ;;  %v1515_v54 = vld [vmem:[%s2086_s1 + $0x184] ss:$12 sps:$4 sm:$0xff]   ;;  %v1516_v55 = vld [vmem:[%s2086_s1 + $0x188] ss:$12 sps:$4 sm:$0xff]   ;;  %v1513_v56 = vld [vmem:[%s2086_s1 + $0x180] ss:$12 sps:$4 sm:$0xff]  }
  0x13   :  { %289 = vmatpush1.bf16.msra.mxu0 %v1465_v15  ;;  %341 = vmatprep.subr.bf16.mxu1 %v1595_v0  ;;  %v1519_v57 = vld [vmem:[%s2086_s1 + $0x19c] ss:$12 sps:$4 sm:$0xff]   ;;  %v1520_v58 = vld [vmem:[%s2086_s1 + $0x1a0] ss:$12 sps:$4 sm:$0xff]   ;;  %v1517_v59 = vld [vmem:[%s2086_s1 + $0x198] ss:$12 sps:$4 sm:$0xff]  }
  0x14   :  { %290 = vmatprep.subr.bf16.mxu0 %v1466_v16  ;;  %v1523_v60 = vld [vmem:[%s2086_s1 + $0x1b4] ss:$12 sps:$4 sm:$0xff]   ;;  %v1524_v61 = vld [vmem:[%s2086_s1 + $0x1b8] ss:$12 sps:$4 sm:$0xff]   ;;  %v1521_v62 = vld [vmem:[%s2086_s1 + $0x1b0] ss:$12 sps:$4 sm:$0xff]  }
  0x15   :  { %v1527_v63 = vld [vmem:[%s2086_s1 + $0x1cc] ss:$12 sps:$4 sm:$0xff]   ;;  %v1528_v1 = vld [vmem:[%s2086_s1 + $0x1d0] ss:$12 sps:$4 sm:$0xff]   ;;  %v1525_v2 = vld [vmem:[%s2086_s1 + $0x1c8] ss:$12 sps:$4 sm:$0xff]  }
  0x16   :  { %342 = vmatpush1.bf16.msra.mxu1 %v1468_v17  ;;  %v1531_v3 = vld [vmem:[%s2086_s1 + $0x1e4] ss:$12 sps:$4 sm:$0xff]   ;;  %v1532_v4 = vld [vmem:[%s2086_s1 + $0x1e8] ss:$12 sps:$4 sm:$0xff]   ;;  %v1529_v5 = vld [vmem:[%s2086_s1 + $0x1e0] ss:$12 sps:$4 sm:$0xff]  }
  0x17   :  { %291 = vmatpush1.bf16.msra.mxu0 %v1469_v18  ;;  %343 = vmatprep.subr.bf16.mxu1 %v1595_v0  ;;  %v1535_v6 = vld [vmem:[%s2086_s1 + $0x1fc] ss:$12 sps:$4 sm:$0xff]   ;;  %v1536_v7 = vld [vmem:[%s2086_s1 + $0x200] ss:$12 sps:$4 sm:$0xff]   ;;  %v1533_v8 = vld [vmem:[%s2086_s1 + $0x1f8] ss:$12 sps:$4 sm:$0xff]  }
  0x18   :  { %292 = vmatprep.subr.bf16.mxu0 %v1470_v19  ;;  %v1541_v9 = vld [vmem:[%s2086_s1 + $0x214] ss:$12 sps:$4 sm:$0xff]   ;;  %v1542_v10 = vld [vmem:[%s2086_s1 + $0x218] ss:$12 sps:$4 sm:$0xff]   ;;  %v1539_v11 = vld [vmem:[%s2086_s1 + $0x210] ss:$12 sps:$4 sm:$0xff]  }
  0x19   :  { %v1545_v12 = vld [vmem:[%s2086_s1 + $0x22c] ss:$12 sps:$4 sm:$0xff]   ;;  %v1546_v13 = vld [vmem:[%s2086_s1 + $0x230] ss:$12 sps:$4 sm:$0xff]   ;;  %v1543_v14 = vld [vmem:[%s2086_s1 + $0x228] ss:$12 sps:$4 sm:$0xff]  }
  0x1a   :  { %344 = vmatpush1.bf16.msra.mxu1 %v1472_v20  ;;  %v1549_v15 = vld [vmem:[%s2086_s1 + $0x244] ss:$12 sps:$4 sm:$0xff]   ;;  %v1550_v16 = vld [vmem:[%s2086_s1 + $0x248] ss:$12 sps:$4 sm:$0xff]   ;;  %v1547_v17 = vld [vmem:[%s2086_s1 + $0x240] ss:$12 sps:$4 sm:$0xff]  }
  0x1b   :  { %293 = vmatpush1.bf16.msra.mxu0 %v1473_v21  ;;  %345 = vmatprep.subr.bf16.mxu1 %v1595_v0  ;;  %v1553_v18 = vld [vmem:[%s2086_s1 + $0x25c] ss:$12 sps:$4 sm:$0xff]   ;;  %v1554_v19 = vld [vmem:[%s2086_s1 + $0x260] ss:$12 sps:$4 sm:$0xff]   ;;  %v1551_v20 = vld [vmem:[%s2086_s1 + $0x258] ss:$12 sps:$4 sm:$0xff]  }
  0x1c   :  { %294 = vmatprep.subr.bf16.mxu0 %v1474_v22  ;;  %v1557_v21 = vld [vmem:[%s2086_s1 + $0x274] ss:$12 sps:$4 sm:$0xff]   ;;  %v1558_v22 = vld [vmem:[%s2086_s1 + $0x278] ss:$12 sps:$4 sm:$0xff]  }
  0x1d   :  { %v1583_v45 = vld [vmem:[%s2086_s1 + $0x318] ss:$12 sps:$4 sm:$0xff]  }
  0x1e   :  { %346 = vmatpush1.bf16.msra.mxu1 %v1476_v23  ;;  %v1555_v23 = vld [vmem:[%s2086_s1 + $0x270] ss:$12 sps:$4 sm:$0xff]  }
  0x1f   :  { %295 = vmatpush1.bf16.msra.mxu0 %v1477_v24  ;;  %347 = vmatprep.subr.bf16.mxu1 %v1595_v0  ;;  %v1561_v24 = vld [vmem:[%s2086_s1 + $0x28c] ss:$12 sps:$4 sm:$0xff]  }
  0x20   :  { %296 = vmatprep.subr.bf16.mxu0 %v1478_v26  ;;  %v1562_v26 = vld [vmem:[%s2086_s1 + $0x290] ss:$12 sps:$4 sm:$0xff]  }
  0x22   :  { %348 = vmatpush1.bf16.msra.mxu1 %v1480_v27  ;;  %v1559_v27 = vld [vmem:[%s2086_s1 + $0x288] ss:$12 sps:$4 sm:$0xff]  }
  0x23   :  { %297 = vmatpush1.bf16.msra.mxu0 %v1481_v28  ;;  %349 = vmatprep.subr.bf16.mxu1 %v1595_v0  ;;  %v1565_v28 = vld [vmem:[%s2086_s1 + $0x2a4] ss:$12 sps:$4 sm:$0xff]  }
  0x24   :  { %298 = vmatprep.subr.bf16.mxu0 %v1482_v29  ;;  %v1566_v29 = vld [vmem:[%s2086_s1 + $0x2a8] ss:$12 sps:$4 sm:$0xff]  }
  0x26   :  { %350 = vmatpush1.bf16.msra.mxu1 %v1484_v30  ;;  %v1563_v30 = vld [vmem:[%s2086_s1 + $0x2a0] ss:$12 sps:$4 sm:$0xff]  }
  0x27   :  { %299 = vmatpush1.bf16.msra.mxu0 %v1485_v31  ;;  %351 = vmatprep.subr.bf16.mxu1 %v1595_v0  ;;  %v1569_v31 = vld [vmem:[%s2086_s1 + $0x2bc] ss:$12 sps:$4 sm:$0xff]  }
  0x28   :  { %300 = vmatprep.subr.bf16.mxu0 %v1486_v32  ;;  %v1567_v32 = vld [vmem:[%s2086_s1 + $0x2b8] ss:$12 sps:$4 sm:$0xff]  }
  0x2a   :  { %352 = vmatpush1.bf16.msra.mxu1 %v1488_v33  ;;  %v1573_v33 = vld [vmem:[%s2086_s1 + $0x2d4] ss:$12 sps:$4 sm:$0xff]  }
  0x2b   :  { %301 = vmatpush1.bf16.msra.mxu0 %v1489_v34  ;;  %353 = vmatprep.subr.bf16.mxu1 %v1595_v0  ;;  %v1574_v34 = vld [vmem:[%s2086_s1 + $0x2d8] ss:$12 sps:$4 sm:$0xff]  }
  0x2c   :  { %302 = vmatprep.subr.bf16.mxu0 %v1490_v35  ;;  %v1571_v35 = vld [vmem:[%s2086_s1 + $0x2d0] ss:$12 sps:$4 sm:$0xff]  }
  0x2e   :  { %354 = vmatpush1.bf16.msra.mxu1 %v1492_v36  ;;  %v1577_v36 = vld [vmem:[%s2086_s1 + $0x2ec] ss:$12 sps:$4 sm:$0xff]  }
  0x2f   :  { %303 = vmatpush1.bf16.msra.mxu0 %v1493_v37  ;;  %671 = vmatprep.subr.bf16.mxu1 %v1595_v0  ;;  %v1578_v37 = vld [vmem:[%s2086_s1 + $0x2f0] ss:$12 sps:$4 sm:$0xff]  }
  0x30   :  { %620 = vmatprep.subr.bf16.mxu0 %v1499_v38  ;;  %v1575_v38 = vld [vmem:[%s2086_s1 + $0x2e8] ss:$12 sps:$4 sm:$0xff]  }
  0x31   :  { %364 = vmatmul.mubr.bf16.vlgmr.msra.gmra.mrb[0].mxu1 %v1751_v39 }
  0x32   :  { %313 = vmatmul.mubr.bf16.vlgmr.msra.gmra.mrb[0].mxu0 %v1751_v39  ;;  %672 = vmatpush1.bf16.msra.mxu1 %v1500_v40  ;;  %v1581_v40 = vld [vmem:[%s2086_s1 + $0x304] ss:$12 sps:$4 sm:$0xff]  }
  0x33   :  { %621 = vmatpush1.bf16.msra.mxu0 %v1497_v41  ;;  %673 = vmatprep.subr.bf16.mxu1 %v1595_v0  ;;  %v1582_v41 = vld [vmem:[%s2086_s1 + $0x308] ss:$12 sps:$4 sm:$0xff]  }
  0x34   :  { %622 = vmatprep.subr.bf16.mxu0 %v1503_v42  ;;  %1260 = vmatprep.mubr.msk.bf16.mxu0 %vm273_vm0, %v1778_v47  ;;  %v1579_v42 = vld [vmem:[%s2086_s1 + $0x300] ss:$12 sps:$4 sm:$0xff]  }
  0x35   :  { %1262 = vmatprep.mubr.msk.bf16.mxu1 %vm273_vm0, %v1778_v47 }
  0x36   :  { %674 = vmatpush1.bf16.msra.mxu1 %v1504_v43  ;;  %v1585_v43 = vld [vmem:[%s2086_s1 + $0x31c] ss:$12 sps:$4 sm:$0xff]  }
  0x37   :  { %623 = vmatpush1.bf16.msra.mxu0 %v1501_v44  ;;  %675 = vmatprep.subr.bf16.mxu1 %v1595_v0  ;;  %v1586_v44 = vld [vmem:[%s2086_s1 + $0x320] ss:$12 sps:$4 sm:$0xff]  }
  0x38   :  { %624 = vmatprep.subr.bf16.mxu0 %v1507_v46  ;;  %v1589_v46 = vld [vmem:[%s2086_s1 + $0x334] ss:$12 sps:$4 sm:$0xff]  }
  0x39   :  { %372 = vmatmul.mubr.bf16.gmra.mrb[4].mxu1 %v1780_v48 }
  0x3a   :  { %676 = vmatpush1.bf16.msra.mxu1 %v1508_v49  ;;  %323 = vmatmul.mubr.bf16.gmra.mrb[4].mxu0 %v1780_v48  ;;  %v1590_v49 = vld [vmem:[%s2086_s1 + $0x338] ss:$12 sps:$4 sm:$0xff]  }
  0x3b   :  { %625 = vmatpush1.bf16.msra.mxu0 %v1505_v50  ;;  %677 = vmatprep.subr.bf16.mxu1 %v1595_v0  ;;  %v1587_v50 = vld [vmem:[%s2086_s1 + $0x330] ss:$12 sps:$4 sm:$0xff]  }
  0x3c   :  { %626 = vmatprep.subr.bf16.mxu0 %v1511_v51  ;;  %1349 = vmatprep.mubr.msk.bf16.mxu1 %vm273_vm0, %v1699_v25  ;;  %v1593_v51 = vld [vmem:[%s2086_s1 + $0x34c] ss:$12 sps:$4 sm:$0xff]  }
  0x3d   :  { %1347 = vmatprep.mubr.msk.bf16.mxu0 %vm273_vm0, %v1699_v25 }
  0x3e   :  { %678 = vmatpush1.bf16.msra.mxu1 %v1512_v52  ;;  %v1594_v52 = vld [vmem:[%s2086_s1 + $0x350] ss:$12 sps:$4 sm:$0xff]  }
  0x3f   :  { %627 = vmatpush1.bf16.msra.mxu0 %v1509_v53  ;;  %679 = vmatprep.subr.bf16.mxu1 %v1595_v0  ;;  %v1591_v53 = vld [vmem:[%s2086_s1 + $0x348] ss:$12 sps:$4 sm:$0xff]  }
  0x40   :  { %628 = vmatprep.subr.bf16.mxu0 %v1515_v54 }
  0x42   :  { %680 = vmatpush1.bf16.msra.mxu1 %v1516_v55 }
  0x43   :  { %629 = vmatpush1.bf16.msra.mxu0 %v1513_v56  ;;  %681 = vmatprep.subr.bf16.mxu1 %v1595_v0 }
  0x44   :  { %630 = vmatprep.subr.bf16.mxu0 %v1519_v57 }
  0x46   :  { %682 = vmatpush1.bf16.msra.mxu1 %v1520_v58 }
  0x47   :  { %631 = vmatpush1.bf16.msra.mxu0 %v1517_v59  ;;  %683 = vmatprep.subr.bf16.mxu1 %v1595_v0 }
  0x48   :  { %632 = vmatprep.subr.bf16.mxu0 %v1523_v60 }
  0x4a   :  { %684 = vmatpush1.bf16.msra.mxu1 %v1524_v61 }
  0x4b   :  { %633 = vmatpush1.bf16.msra.mxu0 %v1521_v62  ;;  %685 = vmatprep.subr.bf16.mxu1 %v1595_v0 }
  0x4c   :  { %634 = vmatprep.subr.bf16.mxu0 %v1527_v63 }
  0x4e   :  { %686 = vmatpush1.bf16.msra.mxu1 %v1528_v1 }
  0x4f   :  { %635 = vmatpush1.bf16.msra.mxu0 %v1525_v2  ;;  %687 = vmatprep.subr.bf16.mxu1 %v1595_v0 }
  0x50   :  { %636 = vmatprep.subr.bf16.mxu0 %v1531_v3 }
  0x52   :  { %688 = vmatpush1.bf16.msra.mxu1 %v1532_v4 }
  0x53   :  { %637 = vmatpush1.bf16.msra.mxu0 %v1529_v5  ;;  %689 = vmatprep.subr.bf16.mxu1 %v1595_v0 }
  0x54   :  { %638 = vmatprep.subr.bf16.mxu0 %v1535_v6 }
  0x56   :  { %690 = vmatpush1.bf16.msra.mxu1 %v1536_v7 }
  0x57   :  { %639 = vmatpush1.bf16.msra.mxu0 %v1533_v8  ;;  %691 = vmatprep.subr.bf16.mxu1 %v1595_v0 }
  0x58   :  { %640 = vmatprep.subr.bf16.mxu0 %v1541_v9 }
  0x5a   :  { %692 = vmatpush1.bf16.msra.mxu1 %v1542_v10 }
  0x5b   :  { %641 = vmatpush1.bf16.msra.mxu0 %v1539_v11  ;;  %693 = vmatprep.subr.bf16.mxu1 %v1595_v0 }
  0x5c   :  { %642 = vmatprep.subr.bf16.mxu0 %v1545_v12 }
  0x5e   :  { %694 = vmatpush1.bf16.msra.mxu1 %v1546_v13 }
  0x5f   :  { %643 = vmatpush1.bf16.msra.mxu0 %v1543_v14  ;;  %1011 = vmatprep.subr.bf16.mxu1 %v1595_v0 }
  0x60   :  { %960 = vmatprep.subr.bf16.mxu0 %v1549_v15 }
  0x61   :  { %704 = vmatmul.mubr.bf16.vlgmr.msra.gmra.mrb[8].mxu1 %v1751_v39 }
  0x62   :  { %653 = vmatmul.mubr.bf16.vlgmr.msra.gmra.mrb[8].mxu0 %v1751_v39  ;;  %1012 = vmatpush1.bf16.msra.mxu1 %v1550_v16 }
  0x63   :  { %961 = vmatpush1.bf16.msra.mxu0 %v1547_v17  ;;  %1013 = vmatprep.subr.bf16.mxu1 %v1595_v0 }
  0x64   :  { %962 = vmatprep.subr.bf16.mxu0 %v1553_v18  ;;  %1350 = vmatprep.mubr.msk.bf16.mxu1 %vm273_vm0, %v1778_v47 }
  0x65   :  { %1348 = vmatprep.mubr.msk.bf16.mxu0 %vm273_vm0, %v1778_v47 }
  0x66   :  { %1014 = vmatpush1.bf16.msra.mxu1 %v1554_v19 }
  0x67   :  { %963 = vmatpush1.bf16.msra.mxu0 %v1551_v20  ;;  %1015 = vmatprep.subr.bf16.mxu1 %v1595_v0 }
  0x68   :  { %964 = vmatprep.subr.bf16.mxu0 %v1557_v21 }
  0x69   :  { %712 = vmatmul.mubr.bf16.gmra.mrb[12].mxu1 %v1780_v48 }
  0x6a   :  { %663 = vmatmul.mubr.bf16.gmra.mrb[12].mxu0 %v1780_v48  ;;  %1016 = vmatpush1.bf16.msra.mxu1 %v1558_v22 }
  0x6b   :  { %965 = vmatpush1.bf16.msra.mxu0 %v1555_v23  ;;  %1017 = vmatprep.subr.bf16.mxu1 %v1595_v0 }
  0x6c   :  { %966 = vmatprep.subr.bf16.mxu0 %v1561_v24  ;;  %1437 = vmatprep.mubr.msk.bf16.mxu1 %vm273_vm0, %v1699_v25 }
  0x6d   :  { %1435 = vmatprep.mubr.msk.bf16.mxu0 %vm273_vm0, %v1699_v25  ;;  %v1570_v25 = vld [vmem:[%s2086_s1 + $0x2c0] ss:$12 sps:$4 sm:$0xff]  }
  0x6e   :  { %1018 = vmatpush1.bf16.msra.mxu1 %v1562_v26 }
  0x6f   :  { %967 = vmatpush1.bf16.msra.mxu0 %v1559_v27  ;;  %1019 = vmatprep.subr.bf16.mxu1 %v1595_v0 }
  0x70   :  { %968 = vmatprep.subr.bf16.mxu0 %v1565_v28 }
  0x72   :  { %1020 = vmatpush1.bf16.msra.mxu1 %v1566_v29 }
  0x73   :  { %969 = vmatpush1.bf16.msra.mxu0 %v1563_v30  ;;  %1021 = vmatprep.subr.bf16.mxu1 %v1595_v0 }
  0x74   :  { %970 = vmatprep.subr.bf16.mxu0 %v1569_v31 }
  0x76   :  { %1022 = vmatpush1.bf16.msra.mxu1 %v1570_v25 }
  0x77   :  { %971 = vmatpush1.bf16.msra.mxu0 %v1567_v32  ;;  %1023 = vmatprep.subr.bf16.mxu1 %v1595_v0 }
  0x78   :  { %972 = vmatprep.subr.bf16.mxu0 %v1573_v33 }
  0x7a   :  { %1024 = vmatpush1.bf16.msra.mxu1 %v1574_v34 }
  0x7b   :  { %973 = vmatpush1.bf16.msra.mxu0 %v1571_v35  ;;  %1025 = vmatprep.subr.bf16.mxu1 %v1595_v0 }
  0x7c   :  { %974 = vmatprep.subr.bf16.mxu0 %v1577_v36 }
  0x7e   :  { %1026 = vmatpush1.bf16.msra.mxu1 %v1578_v37 }
  0x7f   :  { %975 = vmatpush1.bf16.msra.mxu0 %v1575_v38  ;;  %1027 = vmatprep.subr.bf16.mxu1 %v1595_v0 }
  0x80   :  { %976 = vmatprep.subr.bf16.mxu0 %v1581_v40 }
  0x82   :  { %1028 = vmatpush1.bf16.msra.mxu1 %v1582_v41 }
  0x83   :  { %977 = vmatpush1.bf16.msra.mxu0 %v1579_v42  ;;  %1029 = vmatprep.subr.bf16.mxu1 %v1595_v0 }
  0x84   :  { %978 = vmatprep.subr.bf16.mxu0 %v1585_v43 }
  0x86   :  { %1030 = vmatpush1.bf16.msra.mxu1 %v1586_v44  ;;  %v1147_v44 = vlaneseq }
  0x87   :  { %979 = vmatpush1.bf16.msra.mxu0 %v1583_v45  ;;  %1031 = vmatprep.subr.bf16.mxu1 %v1595_v0 }
  0x88   :  { %980 = vmatprep.subr.bf16.mxu0 %v1589_v46  ;;  %v1148_v45 = vshrl.u32 %v1147_v44, 7 }
  0x8a   :  { %1032 = vmatpush1.bf16.msra.mxu1 %v1590_v49  ;;  %v1157_v49 = vsub.s32 2, %v1148_v45 }
  0x8b   :  { %981 = vmatpush1.bf16.msra.mxu0 %v1587_v50  ;;  %1033 = vmatprep.subr.bf16.mxu1 %v1595_v0 }
  0x8c   :  { %982 = vmatprep.subr.bf16.mxu0 %v1593_v51 }
  0x8e   :  { %1034 = vmatpush1.bf16.msra.mxu1 %v1594_v52 }
  0x8f   :  { %983 = vmatpush1.bf16.msra.mxu0 %v1591_v53  ;;  %v1145_v53 = vld [vmem:[%s2088_s2] sm:$0x7] }
  0x91   :  { %1044 = vmatmul.mubr.bf16.vlgmr.msra.gmra.mrb[16].mxu1 %v1751_v39 }
  0x92   :  { %993 = vmatmul.mubr.bf16.vlgmr.msra.gmra.mrb[16].mxu0 %v1751_v39  ;;  %1438 = vmatprep.mubr.msk.bf16.mxu1 %vm273_vm0, %v1778_v47 }
  0x93   :  { %1436 = vmatprep.mubr.msk.bf16.mxu0 %vm273_vm0, %v1778_v47 }
  0x99   :  { %1052 = vmatmul.mubr.bf16.gmra.mrb[20].mxu1 %v1780_v48 }
  0x9a   :  { %1003 = vmatmul.mubr.bf16.gmra.mrb[20].mxu0 %v1780_v48 }
 0x104   :  { %v365_v0 = vpop.f32.mrb[0].mxu1 }
 0x105   :  { %v314_v54 = vpop.f32.mrb[0].mxu0  ;;  %v367_v55 = vpop.f32.mrb[1].mxu1 }
 0x106   :  { %v316_v56 = vpop.f32.mrb[1].mxu0  ;;  %v368_v57 = vpop.f32.mrb[2].mxu1 }
 0x107   :  { %v318_v58 = vpop.f32.mrb[2].mxu0  ;;  %v370_v59 = vpop.f32.mrb[3].mxu1 }
 0x108   :  { %v320_v60 = vpop.f32.mrb[3].mxu0 }
 0x10c   :  { %v373_v61 = vpop.f32.mrb[4].mxu1 }
 0x10d   :  { %v324_v39 = vpop.f32.mrb[4].mxu0  ;;  %v375_v62 = vpop.f32.mrb[5].mxu1 }
 0x10e   :  { %v326_v63 = vpop.f32.mrb[5].mxu0  ;;  %v376_v1 = vpop.f32.mrb[6].mxu1 }
 0x10f   :  { %v328_v2 = vpop.f32.mrb[6].mxu0  ;;  %v377_v3 = vpop.f32.mrb[7].mxu1 }
 0x110   :  { %v329_v47 = vpop.f32.mrb[7].mxu0 }
 0x134   :  { %v705_v4 = vpop.f32.mrb[8].mxu1 }
 0x135   :  { %v1075_v5 = vrot.slane %v705_v4, 1  ;;  %v654_v6 = vpop.f32.mrb[8].mxu0  ;;  %v707_v48 = vpop.f32.mrb[9].mxu1 }
 0x136   :  { %v1069_v7 = vrot.slane %v654_v6, 1  ;;  %v656_v8 = vpop.f32.mrb[9].mxu0  ;;  %v708_v9 = vpop.f32.mrb[10].mxu1 }
 0x137   :  { %v1076_v10 = vrot.slane %v708_v9, 1  ;;  %v658_v11 = vpop.f32.mrb[10].mxu0  ;;  %v710_v12 = vpop.f32.mrb[11].mxu1  ;;  %v1072_v15 = vrot.slane %v656_v8, 1 }
 0x138   :  { %v1070_v13 = vrot.slane %v658_v11, 1  ;;  %v660_v14 = vpop.f32.mrb[11].mxu0 }
 0x139   :  { %v1077_v16 = vsel %vm1068_vm1, %v1075_v5, %v1076_v10  ;;  %v1073_v17 = vrot.slane %v660_v14, 1 }
 0x13a   :  { %v1095_v18 = vadd.f32 %v1077_v16, %v365_v0  ;;  %v1071_v19 = vsel %vm1068_vm1, %v1069_v7, %v1070_v13  ;;  %v1149_v0 = vsub.s32 0, %v1148_v45 }
 0x13b   :  { %v1093_v20 = vadd.f32 %v1071_v19, %v314_v54  ;;  %v1074_v21 = vsel %vm1068_vm1, %v1072_v15, %v1073_v17 }
 0x13c   :  { %v1094_v22 = vadd.f32 %v1074_v21, %v316_v56  ;;  %v713_v23 = vpop.f32.mrb[12].mxu1  ;;  %v1153_v56 = vsub.s32 1, %v1148_v45  ;;  %v1150_v2 = vrot.slane %v1145_v53, %v1149_v0 }
 0x13d   :  { %v1082_v24 = vrot.slane %v713_v23, 1  ;;  %v664_v26 = vpop.f32.mrb[12].mxu0  ;;  %v715_v27 = vpop.f32.mrb[13].mxu1 }
 0x13e   :  { %v1078_v28 = vrot.slane %v664_v26, 1  ;;  %v666_v29 = vpop.f32.mrb[13].mxu0  ;;  %v716_v30 = vpop.f32.mrb[14].mxu1  ;;  %v1154_v5 = vrot.slane %v1145_v53, %v1153_v56 }
 0x13f   :  { %v1083_v31 = vsel %vm1068_vm1, %v1076_v10, %v1082_v24  ;;  %v1101_v25 = vadd.f32 %v1082_v24, %v373_v61  ;;  %v1080_v32 = vrot.slane %v666_v29, 1  ;;  %v668_v33 = vpop.f32.mrb[14].mxu0  ;;  %v717_v34 = vpop.f32.mrb[15].mxu1  ;;  %v1158_v61 = vrot.slane %v1145_v53, %v1157_v49 }
 0x140   :  { %v1098_v35 = vadd.f32 %v1083_v31, %v368_v57  ;;  %v1079_v36 = vsel %vm1068_vm1, %v1070_v13, %v1078_v28  ;;  %v1099_v37 = vadd.f32 %v1078_v28, %v324_v39  ;;  %v669_v38 = vpop.f32.mrb[15].mxu0 }
 0x141   :  { %v1096_v40 = vadd.f32 %v1079_v36, %v318_v58  ;;  %v1081_v41 = vsel %vm1068_vm1, %v1073_v17, %v1080_v32  ;;  %v1100_v42 = vadd.f32 %v1080_v32, %v326_v63 }
 0x142   :  { %v2035_v43 = vadd.f32 %v1081_v41, %v320_v60 }
 0x164   :  { %v1045_v46 = vpop.f32.mrb[16].mxu1 }
 0x165   :  { %v1118_v50 = vrot.slane %v1045_v46, 2  ;;  %v994_v51 = vpop.f32.mrb[16].mxu0  ;;  %v1047_v52 = vpop.f32.mrb[17].mxu1 }
 0x166   :  { %v996_v54 = vpop.f32.mrb[17].mxu0  ;;  %v1048_v55 = vpop.f32.mrb[18].mxu1  ;;  %v1112_v60 = vrot.slane %v994_v51, 2 }
 0x167   :  { %v1119_v57 = vrot.slane %v1048_v55, 2  ;;  %v998_v58 = vpop.f32.mrb[18].mxu0  ;;  %v1050_v59 = vpop.f32.mrb[19].mxu1  ;;  %v1115_v63 = vrot.slane %v996_v54, 2 }
 0x168   :  { %v1113_v39 = vrot.slane %v998_v58, 2  ;;  %v1000_v62 = vpop.f32.mrb[19].mxu0 }
 0x169   :  { %v1120_v1 = vsel %vm1111_vm2, %v1118_v50, %v1119_v57  ;;  %v1116_v3 = vrot.slane %v1000_v62, 2 }
 0x16a   :  { %v1138_v47 = vadd.f32 %v1120_v1, %v1095_v18  ;;  %v1114_v4 = vsel %vm1111_vm2, %v1112_v60, %v1113_v39 }
 0x16b   :  { %v1136_v6 = vadd.f32 %v1114_v4, %v1093_v20  ;;  %v1117_v48 = vsel %vm1111_vm2, %v1115_v63, %v1116_v3 }
 0x16c   :  { %v1164_v7 = vadd.f32 %v1158_v61, %v1138_v47  ;;  %v1137_v8 = vadd.f32 %v1117_v48, %v1094_v22  ;;  %v1053_v9 = vpop.f32.mrb[20].mxu1 }
 0x16d   :  { %v1162_v10 = vadd.f32 %v1150_v2, %v1136_v6  ;;  %v1125_v11 = vrot.slane %v1053_v9, 2  ;;  %v1004_v12 = vpop.f32.mrb[20].mxu0  ;;  %v1055_v13 = vpop.f32.mrb[21].mxu1 }
 0x16e   :  { %v1173_v14 = vmax.f32 %v1164_v7, 0.0  ;;  %v1163_v15 = vadd.f32 %v1154_v5, %v1137_v8  ;;  %v1121_v16 = vrot.slane %v1004_v12, 2  ;;  %v1006_v17 = vpop.f32.mrb[21].mxu0  ;;  %v1056_v19 = vpop.f32.mrb[22].mxu1 }
 0x16f   :  { %v1171_v21 = vmax.f32 %v1162_v10, 0.0  ;;  %v1126_v18 = vsel %vm1111_vm2, %v1119_v57, %v1125_v11  ;;  %v1144_v23 = vadd.f32 %v1125_v11, %v1101_v25  ;;  %v1123_v24 = vrot.slane %v1006_v17, 2  ;;  %v1008_v20 = vpop.f32.mrb[22].mxu0  ;;  %v1057_v26 = vpop.f32.mrb[23].mxu1 }
 0x170   :  { %1182 = vst [vmem:[%s2089_s3 + $0x10] sm:$0xff] %v1173_v14  ;;  %v1172_v22 = vmax.f32 %v1163_v15, 0.0  ;;  %v1141_v27 = vadd.f32 %v1126_v18, %v1098_v35  ;;  %v1122_v28 = vsel %vm1111_vm2, %v1113_v39, %v1121_v16  ;;  %v1142_v29 = vadd.f32 %v1121_v16, %v1099_v37  ;;  %v1009_v30 = vpop.f32.mrb[23].mxu0 }
 0x171   :  { %1180 = vst [vmem:[%s2089_s3] sm:$0xff] %v1171_v21  ;;  %v1170_v31 = vadd.f32 %v1158_v61, %v1144_v23  ;;  %v1139_v32 = vadd.f32 %v1122_v28, %v1096_v40  ;;  %v1124_v25 = vsel %vm1111_vm2, %v1116_v3, %v1123_v24  ;;  %v1143_v33 = vadd.f32 %v1123_v24, %v1100_v42 }
 0x172   :  { %1181 = vst [vmem:[%s2089_s3 + $0x8] sm:$0xff] %v1172_v22  ;;  %v1167_v34 = vadd.f32 %v1158_v61, %v1141_v27  ;;  %v1168_v36 = vadd.f32 %v1150_v2, %v1142_v29  ;;  %v1140_v35 = vadd.f32 %v1124_v25, %v2035_v43 }
 0x173   :  { %v1179_v38 = vmax.f32 %v1170_v31, 0.0  ;;  %v1165_v37 = vadd.f32 %v1150_v2, %v1139_v32  ;;  %v1169_v41 = vadd.f32 %v1154_v5, %v1143_v33 }
 0x174   :  { %v1176_v44 = vmax.f32 %v1167_v34, 0.0  ;;  %v1177_v45 = vmax.f32 %v1168_v36, 0.0  ;;  %v1166_v46 = vadd.f32 %v1154_v5, %v1140_v35 }
 0x175   :  { %v1200_v49 = vrot.slane %v1179_v38, 4  ;;  %v1174_v40 = vmax.f32 %v1165_v37, 0.0  ;;  %v1178_v50 = vmax.f32 %v1169_v41, 0.0 }
 0x176   :  { %1185 = vst [vmem:[%s2089_s3 + $0x28] sm:$0x3] %v1176_v44  ;;  %v1199_v42 = vrot.slane %v1176_v44, 4  ;;  %v1194_v51 = vrot.slane %v1177_v45, 4  ;;  %v1175_v52 = vmax.f32 %v1166_v46, 0.0 }
 0x177   :  { %1444 = vst [vmem:[%s2089_s3 + $0x58] sm:$0x3] %v1200_v49  ;;  %1183 = vst [vmem:[%s2089_s3 + $0x18] sm:$0x3] %v1174_v40  ;;  %v1193_v43 = vrot.slane %v1174_v40, 4  ;;  %v1197_v53 = vrot.slane %v1178_v50, 4 }
 0x178   :  { %v1201_v0 = vsel %vm1192_vm3, %v1199_v42, %v1200_v49  ;;  %1442 = vst [vmem:[%s2089_s3 + $0x48] sm:$0x3] %v1194_v51  ;;  %1184 = vst [vmem:[%s2089_s3 + $0x20] sm:$0x3] %v1175_v52  ;;  %v1196_v54 = vrot.slane %v1175_v52, 4 }
 0x179   :  { %1441 = vst [vmem:[%s2089_s3 + $0x40] sm:$0xff] %v1201_v0  ;;  %v1195_v55 = vsel %vm1192_vm3, %v1193_v43, %v1194_v51  ;;  %1443 = vst [vmem:[%s2089_s3 + $0x50] sm:$0x3] %v1197_v53 }
 0x17a   :  { %1439 = vst [vmem:[%s2089_s3 + $0x30] sm:$0xff] %v1195_v55  ;;  %v1198_v56 = vsel %vm1192_vm3, %v1196_v54, %v1197_v53 }
 0x17b   :  { %1440 = vst [vmem:[%s2089_s3 + $0x38] sm:$0xff] %v1198_v56 }

</bundles_post_ra>
